<compile_context>
chip_gen: v7x
topology: tpu7x:2x2x1
jax: 0.10.0
libtpu: 0.0.40
codegen_flags: <defaults>
</compile_context>

<pallas_src>
import jax
import jax.numpy as jnp
from jax.experimental import pallas as pl
from jax.experimental.pallas import tpu as pltpu


def gated_gcn_kernel(xp_ref, w1_ref, u_ref, v_ref, ee_ref, g_ref, s_ref,
                     ic_ref, out_ref):
    """Single invocation; all operands fit comfortably in VMEM at these sizes.

    Packed layout: a [rows, B*C] array stores batch b in column block b.
    """
    xp = xp_ref[...]                                  # [N, B*Cin]   f32
    w1 = w1_ref[...]                                  # [B*Cin, B*Cout]  block-diag
    u = u_ref[...]                                    # [B*Cout, B*Cout] block-diag
    v = v_ref[...]                                    # [B*Cout, B*Cout] block-diag
    ee = ee_ref[...]                                  # [E, B*Cout]  edge_emb tiled
    G = g_ref[...].astype(jnp.float32)                # [E, N] one-hot (bf16 in memory)
    S = s_ref[...].astype(jnp.float32)                # [N, E] one-hot (bf16 in memory)
    inv_cnt = ic_ref[...]                             # [N, 1] = 1/max(in_degree, 1)

    # Five full-width MXU matmuls — no per-batch loop, no scratch round-trips.
    h = jnp.dot(xp, w1, preferred_element_type=jnp.float32)      # [N, B*Cout]
    x_j = jnp.dot(G, h, preferred_element_type=jnp.float32)      # [E, B*Cout] gather
    msg = ee * jnp.dot(x_j, v, preferred_element_type=jnp.float32)
    aggr = jnp.dot(S, msg, preferred_element_type=jnp.float32) * inv_cnt  # scatter-mean
    pre = jnp.dot(h, u, preferred_element_type=jnp.float32) + aggr        # [N, B*Cout]

    # BatchNorm1d(num_features=N) in training mode: stats over (batch, feature),
    # which in packed layout is simply a per-row reduction over the lane axis.
    inv_denom = 1.0 / pre.shape[1]                    # 1/(B*Cout), exact power of 2 here
    mean = jnp.sum(pre, axis=1, keepdims=True) * inv_denom
    diff = pre - mean
    var = jnp.sum(diff * diff, axis=1, keepdims=True) * inv_denom
    normed = diff * jax.lax.rsqrt(var + 1e-5)         # weight=1, bias=0

    out_ref[...] = h + jnp.maximum(normed, 0.0)       # lane-dense [N, B*Cout] store


def gated_gcn_net(X, edge_index, edge_weight, W1, W2, U, V):
    B, N, Cin = X.shape
    E = edge_weight.shape[0]
    Cout = W1.shape[1]

    src = edge_index[0]
    dst = edge_index[1]

    # ---- host-side glue: layout packing + operator construction (no model math
    #      beyond the [E,1]x[1,Cout] edge embedding, hoisted per perf review) ----
    # Packed node features: Xp[n, b*Cin + k] = X[b, n, k]
    Xp = jnp.transpose(X, (1, 0, 2)).reshape(N, B * Cin).astype(jnp.float32)

    eyeB = jnp.eye(B, dtype=jnp.float32)
    W1_bd = jnp.kron(eyeB, W1.astype(jnp.float32))    # [B*Cin,  B*Cout]
    U_bd = jnp.kron(eyeB, U.astype(jnp.float32))      # [B*Cout, B*Cout]
    V_bd = jnp.kron(eyeB, V.astype(jnp.float32))      # [B*Cout, B*Cout]

    # edge embedding (shared across the batch), tiled into packed layout
    edge_emb = edge_weight[:, None].astype(jnp.float32) * W2.astype(jnp.float32)  # [E, Cout]
    ee_packed = jnp.tile(edge_emb, (1, B))            # [E, B*Cout]

    # One-hot gather/scatter operators.  0/1 values are exact in bf16 -> half
    # the bytes for the ExN operators; widened to f32 inside the kernel.
    G = (src[:, None] == jnp.arange(N)[None, :]).astype(jnp.bfloat16)   # [E, N]
    S = (jnp.arange(N)[:, None] == dst[None, :]).astype(jnp.bfloat16)   # [N, E]
    deg = jnp.sum((jnp.arange(N)[:, None] == dst[None, :]), axis=1).astype(jnp.float32)
    inv_cnt = (1.0 / jnp.maximum(deg, 1.0)).reshape(N, 1)               # exact f32 recip

    vmem = pl.BlockSpec(memory_space=pltpu.MemorySpace.VMEM)
    out_packed = pl.pallas_call(
        gated_gcn_kernel,
        out_shape=jax.ShapeDtypeStruct((N, B * Cout), jnp.float32),
        in_specs=[vmem] * 8,
        out_specs=vmem,
    )(Xp, W1_bd, U_bd, V_bd, ee_packed, G, S, inv_cnt)

    # Unpack [N, B*Cout] -> [B, N, Cout]
    return jnp.transpose(out_packed.reshape(N, B, Cout), (1, 0, 2))


def reference(X, edge_index, edge_weight, W1, W2, U, V):
    """Pure-JAX reference of the PyTorch forward (for correctness check)."""
    B, N, _ = X.shape
    src, dst = edge_index[0], edge_index[1]
    h = jnp.einsum('bni,io->bno', X, W1)
    edge_emb = edge_weight[:, None] * W2[0]                       # [E, Cout]
    x_j = h[:, src, :]                                            # [B, E, Cout]
    msg = edge_emb[None] * jnp.einsum('beo,op->bep', x_j, V)
    summ = jax.vmap(lambda m: jax.ops.segment_sum(m, dst, num_segments=N))(msg)
    cnt = jnp.maximum(jax.ops.segment_sum(jnp.ones_like(edge_weight), dst,
                                          num_segments=N), 1.0)
    aggr = summ / cnt[None, :, None]
    pre = jnp.einsum('bno,op->bnp', h, U) + aggr
    mean = jnp.mean(pre, axis=(0, 2), keepdims=True)
    var = jnp.mean((pre - mean) ** 2, axis=(0, 2), keepdims=True)
    normed = (pre - mean) / jnp.sqrt(var + 1e-5)
    return h + jnp.maximum(normed, 0.0)


def xavier_uniform(key, shape):
    fan_in, fan_out = shape
    bound = (6.0 / (fan_in + fan_out)) ** 0.5
    return jax.random.uniform(key, shape, jnp.float32, -bound, bound)


if __name__ == "__main__":
    B, N, E = 2, 8, 16
    C_IN, C_OUT = 8, 128

    key = jax.random.PRNGKey(0)
    kx, ke, kw, k1, k2, k3, k4 = jax.random.split(key, 7)

    X = jax.random.normal(kx, (B, N, C_IN), jnp.float32)
    edge_index = jax.random.randint(ke, (2, E), 0, N, jnp.int32)
    edge_weight = jax.random.normal(kw, (E,), jnp.float32)

    W1 = xavier_uniform(k1, (C_IN, C_OUT))
    W2 = xavier_uniform(k2, (1, C_OUT))
    U = xavier_uniform(k3, (C_OUT, C_OUT))
    V = xavier_uniform(k4, (C_OUT, C_OUT))

    out = gated_gcn_net(X, edge_index, edge_weight, W1, W2, U, V)
    out = jax.block_until_ready(out)

    ref = reference(X, edge_index, edge_weight, W1, W2, U, V)
    assert out.shape == (B, N, C_OUT)
    assert jnp.allclose(out, ref, rtol=1e-4, atol=1e-4), "mismatch vs reference"

    print("KERNEL_OK")
</pallas_src>

<mosaic_0001>
module attributes {stable_mosaic.version = 11 : i64} {
  func.func @gated_gcn_kernel(%arg0: memref<8x16xf32, #tpu.memory_space<vmem>>, %arg1: memref<16x256xf32, #tpu.memory_space<vmem>>, %arg2: memref<256x256xf32, #tpu.memory_space<vmem>>, %arg3: memref<256x256xf32, #tpu.memory_space<vmem>>, %arg4: memref<16x256xf32, #tpu.memory_space<vmem>>, %arg5: memref<16x8xbf16, #tpu.memory_space<vmem>>, %arg6: memref<8x16xbf16, #tpu.memory_space<vmem>>, %arg7: memref<8x1xf32, #tpu.memory_space<vmem>>, %arg8: memref<8x256xf32, #tpu.memory_space<vmem>>) attributes {dimension_semantics = [], scalar_prefetch = 0 : i64, scratch_operands = 0 : i64, tpu.core_type = #tpu.core_type<tc>} {
    %c0 = arith.constant 0 : index
    %c0_0 = arith.constant 0 : index
    %0 = vector.load %arg0[%c0, %c0_0] : memref<8x16xf32, #tpu.memory_space<vmem>>, vector<8x16xf32>
    %c0_1 = arith.constant 0 : index
    %c0_2 = arith.constant 0 : index
    %1 = vector.load %arg1[%c0_1, %c0_2] : memref<16x256xf32, #tpu.memory_space<vmem>>, vector<16x256xf32>
    %c0_3 = arith.constant 0 : index
    %c0_4 = arith.constant 0 : index
    %2 = vector.load %arg2[%c0_3, %c0_4] : memref<256x256xf32, #tpu.memory_space<vmem>>, vector<256x256xf32>
    %c0_5 = arith.constant 0 : index
    %c0_6 = arith.constant 0 : index
    %3 = vector.load %arg3[%c0_5, %c0_6] : memref<256x256xf32, #tpu.memory_space<vmem>>, vector<256x256xf32>
    %c0_7 = arith.constant 0 : index
    %c0_8 = arith.constant 0 : index
    %4 = vector.load %arg4[%c0_7, %c0_8] : memref<16x256xf32, #tpu.memory_space<vmem>>, vector<16x256xf32>
    %c0_9 = arith.constant 0 : index
    %c0_10 = arith.constant 0 : index
    %5 = vector.load %arg5[%c0_9, %c0_10] : memref<16x8xbf16, #tpu.memory_space<vmem>>, vector<16x8xbf16>
    %6 = arith.extf %5 : vector<16x8xbf16> to vector<16x8xf32>
    %c0_11 = arith.constant 0 : index
    %c0_12 = arith.constant 0 : index
    %7 = vector.load %arg6[%c0_11, %c0_12] : memref<8x16xbf16, #tpu.memory_space<vmem>>, vector<8x16xbf16>
    %8 = arith.extf %7 : vector<8x16xbf16> to vector<8x16xf32>
    %c0_13 = arith.constant 0 : index
    %c0_14 = arith.constant 0 : index
    %9 = vector.load %arg7[%c0_13, %c0_14] : memref<8x1xf32, #tpu.memory_space<vmem>>, vector<8x1xf32>
    %cst = arith.constant dense<0.000000e+00> : vector<8x256xf32>
    %10 = tpu.matmul %0, %1, %cst {dimension_numbers = #tpu.dot_dimension_numbers<[1], [0], [0], [1], [0, 0, 1, 1], [], []>} : vector<8x16xf32>, vector<16x256xf32>, vector<8x256xf32> -> vector<8x256xf32>
    %cst_15 = arith.constant dense<0.000000e+00> : vector<16x256xf32>
    %11 = tpu.matmul %6, %10, %cst_15 {dimension_numbers = #tpu.dot_dimension_numbers<[1], [0], [0], [1], [0, 0, 1, 1], [], []>} : vector<16x8xf32>, vector<8x256xf32>, vector<16x256xf32> -> vector<16x256xf32>
    %cst_16 = arith.constant dense<0.000000e+00> : vector<16x256xf32>
    %12 = tpu.matmul %11, %3, %cst_16 {dimension_numbers = #tpu.dot_dimension_numbers<[1], [0], [0], [1], [0, 0, 1, 1], [], []>} : vector<16x256xf32>, vector<256x256xf32>, vector<16x256xf32> -> vector<16x256xf32>
    %13 = arith.mulf %4, %12 : vector<16x256xf32>
    %cst_17 = arith.constant dense<0.000000e+00> : vector<8x256xf32>
    %14 = tpu.matmul %8, %13, %cst_17 {dimension_numbers = #tpu.dot_dimension_numbers<[1], [0], [0], [1], [0, 0, 1, 1], [], []>} : vector<8x16xf32>, vector<16x256xf32>, vector<8x256xf32> -> vector<8x256xf32>
    %15 = vector.broadcast %9 : vector<8x1xf32> to vector<8x256xf32>
    %16 = arith.mulf %14, %15 : vector<8x256xf32>
    %cst_18 = arith.constant dense<0.000000e+00> : vector<8x256xf32>
    %17 = tpu.matmul %10, %2, %cst_18 {dimension_numbers = #tpu.dot_dimension_numbers<[1], [0], [0], [1], [0, 0, 1, 1], [], []>} : vector<8x256xf32>, vector<256x256xf32>, vector<8x256xf32> -> vector<8x256xf32>
    %18 = arith.addf %17, %16 : vector<8x256xf32>
    %cst_19 = arith.constant dense<0.000000e+00> : vector<8xf32>
    %19 = vector.multi_reduction <add>, %18, %cst_19 [1] : vector<8x256xf32> to vector<8xf32>
    %20 = vector.shape_cast %19 : vector<8xf32> to vector<8x1xf32>
    %cst_20 = arith.constant 3.906250e-03 : f32
    %21 = vector.broadcast %cst_20 : f32 to vector<8x1xf32>
    %22 = arith.mulf %20, %21 : vector<8x1xf32>
    %23 = vector.broadcast %22 : vector<8x1xf32> to vector<8x256xf32>
    %24 = arith.subf %18, %23 : vector<8x256xf32>
    %25 = arith.mulf %24, %24 : vector<8x256xf32>
    %cst_21 = arith.constant dense<0.000000e+00> : vector<8xf32>
    %26 = vector.multi_reduction <add>, %25, %cst_21 [1] : vector<8x256xf32> to vector<8xf32>
    %27 = vector.shape_cast %26 : vector<8xf32> to vector<8x1xf32>
    %cst_22 = arith.constant 3.906250e-03 : f32
    %28 = vector.broadcast %cst_22 : f32 to vector<8x1xf32>
    %29 = arith.mulf %27, %28 : vector<8x1xf32>
    %cst_23 = arith.constant 9.99999974E-6 : f32
    %30 = vector.broadcast %cst_23 : f32 to vector<8x1xf32>
    %31 = arith.addf %29, %30 : vector<8x1xf32>
    %32 = math.rsqrt %31 : vector<8x1xf32>
    %33 = vector.broadcast %32 : vector<8x1xf32> to vector<8x256xf32>
    %34 = arith.mulf %24, %33 : vector<8x256xf32>
    %cst_24 = arith.constant 0.000000e+00 : f32
    %35 = vector.broadcast %cst_24 : f32 to vector<8x256xf32>
    %36 = arith.maximumf %34, %35 : vector<8x256xf32>
    %37 = arith.addf %10, %36 : vector<8x256xf32>
    %c0_25 = arith.constant 0 : index
    %c0_26 = arith.constant 0 : index
    %38 = vector.load %arg8[%c0_25, %c0_26] : memref<8x256xf32, #tpu.memory_space<vmem>>, vector<8x256xf32>
    tpu.vector_store %arg8[%c0_25, %c0_26], %37 {strides = array<i32>} : memref<8x256xf32, #tpu.memory_space<vmem>>, vector<8x256xf32>,
    return
  }
}

</mosaic_0001>

<bundles_post_ra>
// kernel: tpu_custom_call.1
= control target key start
LH: loop header
LB: loop body
LE: loop exit
PB: predicated region body
PF: predicated region fallthrough
CT: control target
= control target key end

     0   :  { %13 = vsyncpa [#allocation3], 0  ;;  %s1090_s0 = inlined_call_operand.hbm [shape: f32[8,16], index: 0, kind: input, shape index: {}]   ;;  %s1091_s1 = inlined_call_operand.hbm [shape: f32[16,256], index: 1, kind: input, shape index: {}]   ;;  %s1092_s2 = inlined_call_operand.hbm [shape: f32[256,256], index: 2, kind: input, shape index: {}]   ;;  %s1093_s3 = inlined_call_operand.hbm [shape: f32[256,256], index: 3, kind: input, shape index: {}]   ;;  %s1094_s4 = inlined_call_operand.vmem [shape: f32[16,256], index: 4, kind: input, shape index: {}]   ;;  %s1095_s5 = inlined_call_operand.vmem [shape: bf16[16,8], index: 5, kind: input, shape index: {}]   ;;  %s1096_s6 = inlined_call_operand.vmem [shape: bf16[8,16], index: 6, kind: input, shape index: {}]   ;;  %s1097_s7 = inlined_call_operand.vmem [shape: f32[8,1], index: 7, kind: input, shape index: {}]   ;;  %s1098_s8 = inlined_call_operand.hbm [shape: f32[8,256], index: 8, kind: output, shape index: {}]  }
   0x1   :  { %14 = vsyncpa [#allocation6], 0 }
   0x2   :  { %15 = vsyncpa [#allocation9], 0 }
   0x3   :  { %16 = vsyncpa [#allocation4], 0  ;;  %s932_s27 = smov [#allocation5]   ;;  %s814_s9 = scalar_lea.hbm %s1091_s1, 512 }
   0x4   :  { %s32_s28 = sshll.u32 %s932_s27, 4  ;;  %p815_p0 = scmp.ne.s32.totalorder %s1091_s1, %s814_s9  ;;  %s33_s28 = int_to_ptr.vmem [resolvable:$true] %s32_s28 }
   0x5   :  { %p818_p1 = scmp.lt.u32.totalorder %s814_s9, %s1091_s1 }
   0x7   :  { %p820_p2 = pnand %p818_p1, %p815_p0 }
   0x9   :  { %823 = shalt.err (!%p820_p2)
}
   0xa   :  { %s824_s14 = scalar_lea.vmem %s33_s28, 512  ;;  %p829_p4 = scmp.lt.s32.totalorder %s33_s28, %s33_s28 }
   0xb   :  { %p825_p3 = scmp.ne.s32.totalorder %s33_s28, %s824_s14  ;;  %p830_p5 = scmp.lt.s32.totalorder %s824_s14, %s824_s14 }
   0xd   :  { %p831_p6 = por %p830_p5, %p829_p4 }
   0xf   :  { %p832_p7 = pnand %p831_p6, %p825_p3 }
  0x11   :  { %835 = shalt.err (!%p832_p7)
}
  0x12   :  { %s933_s15 = smov 256   ;;  %s934_s16 = smov 16  }
  0x13   :  { %38 = dma.hbm_to_vmem [thread:$0]  %s1091_s1, 512, %s33_s28, [#allocation6], %s933_s15, %s933_s15, %s934_s16  }
  0x14   :  { %s935_s19 = smov [#allocation2]   ;;  %s936_s21 = smov [#allocation7]  }
  0x15   :  { %s23_s20 = sshll.u32 %s935_s19, 4  ;;  %s44_s22 = sshll.u32 %s936_s21, 4  ;;  %s24_s20 = int_to_ptr.vmem [resolvable:$true] %s23_s20  ;;  %s45_s22 = int_to_ptr.vmem [resolvable:$true] %s44_s22 }
  0x16   :  { %s836_s25 = scalar_lea.hbm %s1090_s0, 128 }
  0x17   :  { %p837_p8 = scmp.ne.s32.totalorder %s1090_s0, %s836_s25  ;;  %p840_p9 = scmp.lt.u32.totalorder %s836_s25, %s1090_s0 }
  0x19   :  { %p842_p10 = pnand %p840_p9, %p837_p8 }
  0x1b   :  { %845 = shalt.err (!%p842_p10)
}
  0x1c   :  { %s846_s1 = scalar_lea.vmem %s24_s20, 128  ;;  %p851_p12 = scmp.lt.s32.totalorder %s24_s20, %s24_s20 }
  0x1d   :  { %p847_p11 = scmp.ne.s32.totalorder %s24_s20, %s846_s1  ;;  %p852_p13 = scmp.lt.s32.totalorder %s846_s1, %s846_s1 }
  0x1f   :  { %p853_p0 = por %p852_p13, %p851_p12 }
  0x21   :  { %p854_p1 = pnand %p853_p0, %p847_p11 }
  0x23   :  { %857 = shalt.err (!%p854_p1)
}
  0x24   :  { %26 = dma.hbm_to_vmem [thread:$0]  %s1090_s0, 128, %s24_s20, [#allocation3]  }
  0x25   :  { %s858_s12 = scalar_lea.hbm %s1092_s2, 8192 }
  0x26   :  { %p859_p2 = scmp.ne.s32.totalorder %s1092_s2, %s858_s12  ;;  %p862_p3 = scmp.lt.u32.totalorder %s858_s12, %s1092_s2 }
  0x28   :  { %p864_p4 = pnand %p862_p3, %p859_p2 }
  0x2a   :  { %867 = shalt.err (!%p864_p4)
}
  0x2b   :  { %s868_s19 = scalar_lea.vmem %s45_s22, 8192  ;;  %p873_p6 = scmp.lt.s32.totalorder %s45_s22, %s45_s22 }
  0x2c   :  { %p869_p5 = scmp.ne.s32.totalorder %s45_s22, %s868_s19  ;;  %p874_p7 = scmp.lt.s32.totalorder %s868_s19, %s868_s19 }
  0x2e   :  { %p875_p8 = por %p874_p7, %p873_p6 }
  0x30   :  { %p876_p9 = pnand %p875_p8, %p869_p5 }
  0x32   :  { %879 = shalt.err (!%p876_p9)
}
  0x33   :  { %50 = dma.hbm_to_vmem [thread:$0]  %s1092_s2, 8192, %s45_s22, [#allocation6], %s933_s15, %s933_s15, %s934_s16  }
  0x34   :  { %s937_s21 = smov [#allocation8]   ;;  %s880_s26 = scalar_lea.hbm %s1093_s3, 8192 }
  0x35   :  { %s56_s23 = sshll.u32 %s937_s21, 4  ;;  %p881_p10 = scmp.ne.s32.totalorder %s1093_s3, %s880_s26  ;;  %s57_s23 = int_to_ptr.vmem [resolvable:$true] %s56_s23 }
  0x36   :  { %p884_p11 = scmp.lt.u32.totalorder %s880_s26, %s1093_s3 }
  0x38   :  { %p886_p12 = pnand %p884_p11, %p881_p10 }
  0x3a   :  { %889 = shalt.err (!%p886_p12)
}
  0x3b   :  { %s890_s28 = scalar_lea.vmem %s57_s23, 8192  ;;  %p895_p0 = scmp.lt.s32.totalorder %s57_s23, %s57_s23 }
  0x3c   :  { %p891_p13 = scmp.ne.s32.totalorder %s57_s23, %s890_s28  ;;  %p896_p1 = scmp.lt.s32.totalorder %s890_s28, %s890_s28 }
  0x3e   :  { %p897_p2 = por %p896_p1, %p895_p0 }
  0x40   :  { %p898_p3 = pnand %p897_p2, %p891_p13 }
  0x42   :  { %901 = shalt.err (!%p898_p3)
}
  0x43   :  { %62 = dma.hbm_to_vmem [thread:$0]  %s1093_s3, 8192, %s57_s23, [#allocation9], %s933_s15, %s933_s15, %s934_s16  }
  0x44   :  { %924 = dma.done.wait [#allocation3], 128  }
  0x45   :  { %925 = vsyncadd [#allocation3], 4294967168 }
  0x46   :  { %926 = dma.done.wait [#allocation6], 8704  }
  0x47   :  { %927 = vsyncadd [#allocation6], 4294958592 }
  0x48   :  { %928 = dma.done.wait [#allocation9], 8192  }
  0x49   :  { %929 = vsyncadd [#allocation9], 4294959104  ;;  %v938_v0 = vmov 0.0   ;;  %v85_v1 = vld [vmem:[#allocation5 + $0x8] sm:$0xff]  ;;  %v87_v2 = vld [vmem:[#allocation5 + $0x18] sm:$0xff]  ;;  %vm227_vm0 = vcmask 130048  }
  0x4a   :  { %295 = vmatprep.mubr.f32.mxu0 %v938_v0  ;;  %373 = vmatprep.mubr.f32.mxu1 %v938_v0  ;;  %v84_v3 = vld [vmem:[#allocation5] sm:$0xff]  ;;  %v666_v4 = vpack.c.bf16 %v87_v2, %v85_v1  ;;  %v86_v5 = vld [vmem:[#allocation5 + $0x10] sm:$0xff]  ;;  %v83_v7 = vld [vmem:[#allocation2] sm:$0xff]  ;;  %vm302_vm1 = vcmask 64512  }
  0x4b   :  { %v668_v6 = vpack.c.bf16 %v86_v5, %v84_v3  ;;  %v663_v8 = vld [vmem:[%s1095_s5] sm:$0xff]   ;;  %v153_v9 = vld [vmem:[#allocation8 + $0x8] sm:$0xff]  ;;  %v152_v11 = vld [vmem:[#allocation8] sm:$0xff] }
  0x4c   :  { %667 = vmatprep.subr.bf16.mxu0 %v666_v4  ;;  %v155_v10 = vld [vmem:[#allocation8 + $0x18] sm:$0xff]  ;;  %v154_v12 = vld [vmem:[#allocation8 + $0x10] sm:$0xff]  ;;  %v157_v13 = vld [vmem:[#allocation8 + $0x28] sm:$0xff]  ;;  %v664_v16 = vunpack.c.l.bf16 %v663_v8  ;;  %v665_v25 = vunpack.c.h.bf16 %v663_v8 }
  0x4d   :  { %669 = vmatpush1.bf16.msra.mxu0 %v668_v6  ;;  %v159_v14 = vld [vmem:[#allocation8 + $0x38] sm:$0xff]  ;;  %v670_v17 = vpack.c.bf16 %v155_v10, %v153_v9  ;;  %v672_v19 = vpack.c.bf16 %v154_v12, %v152_v11  ;;  %v156_v21 = vld [vmem:[#allocation8 + $0x20] sm:$0xff]  ;;  %v158_v22 = vld [vmem:[#allocation8 + $0x30] sm:$0xff] }
  0x4e   :  { %v674_v20 = vpack.c.bf16 %v159_v14, %v157_v13  ;;  %v161_v23 = vld [vmem:[#allocation8 + $0x48] sm:$0xff]  ;;  %v163_v24 = vld [vmem:[#allocation8 + $0x58] sm:$0xff]  ;;  %v676_v26 = vpack.c.bf16 %v158_v22, %v156_v21  ;;  %v160_v28 = vld [vmem:[#allocation8 + $0x40] sm:$0xff] }
  0x4f   :  { %v678_v27 = vpack.c.bf16 %v163_v24, %v161_v23  ;;  %v162_v29 = vld [vmem:[#allocation8 + $0x50] sm:$0xff]  ;;  %v165_v30 = vld [vmem:[#allocation8 + $0x68] sm:$0xff]  ;;  %v167_v31 = vld [vmem:[#allocation8 + $0x78] sm:$0xff] }
  0x50   :  { %658 = vmatmul.mubr.msk.f32.vlgmr.msra.gmra.mrb[0].mxu0 %vm227_vm0, %v83_v7  ;;  %v680_v32 = vpack.c.bf16 %v162_v29, %v160_v28  ;;  %v682_v33 = vpack.c.bf16 %v167_v31, %v165_v30  ;;  %v164_v34 = vld [vmem:[#allocation8 + $0x60] sm:$0xff]  ;;  %v166_v35 = vld [vmem:[#allocation8 + $0x70] sm:$0xff]  ;;  %v169_v36 = vld [vmem:[#allocation8 + $0x88] sm:$0xff] }
  0x51   :  { %534 = vmatprep.mubr.f32.mxu0 %v938_v0  ;;  %v171_v37 = vld [vmem:[#allocation8 + $0x98] sm:$0xff]  ;;  %v684_v38 = vpack.c.bf16 %v166_v35, %v164_v34  ;;  %v168_v40 = vld [vmem:[#allocation8 + $0x80] sm:$0xff]  ;;  %v170_v41 = vld [vmem:[#allocation8 + $0x90] sm:$0xff] }
  0x52   :  { %v686_v39 = vpack.c.bf16 %v171_v37, %v169_v36  ;;  %v173_v42 = vld [vmem:[#allocation8 + $0xa8] sm:$0xff]  ;;  %v175_v43 = vld [vmem:[#allocation8 + $0xb8] sm:$0xff]  ;;  %v688_v44 = vpack.c.bf16 %v170_v41, %v168_v40  ;;  %v172_v46 = vld [vmem:[#allocation8 + $0xa0] sm:$0xff] }
  0x53   :  { %v690_v45 = vpack.c.bf16 %v175_v43, %v173_v42  ;;  %v174_v47 = vld [vmem:[#allocation8 + $0xb0] sm:$0xff]  ;;  %v177_v48 = vld [vmem:[#allocation8 + $0xc8] sm:$0xff]  ;;  %v179_v49 = vld [vmem:[#allocation8 + $0xd8] sm:$0xff] }
  0x54   :  { %v692_v50 = vpack.c.bf16 %v174_v47, %v172_v46  ;;  %v694_v51 = vpack.c.bf16 %v179_v49, %v177_v48  ;;  %v176_v52 = vld [vmem:[#allocation8 + $0xc0] sm:$0xff]  ;;  %v178_v53 = vld [vmem:[#allocation8 + $0xd0] sm:$0xff]  ;;  %v181_v54 = vld [vmem:[#allocation8 + $0xe8] sm:$0xff] }
  0x55   :  { %v183_v55 = vld [vmem:[#allocation8 + $0xf8] sm:$0xff]  ;;  %v696_v56 = vpack.c.bf16 %v178_v53, %v176_v52  ;;  %v180_v58 = vld [vmem:[#allocation8 + $0xe0] sm:$0xff]  ;;  %v182_v59 = vld [vmem:[#allocation8 + $0xf0] sm:$0xff]  ;;  %v939_v52 = vmov 0  }
  0x56   :  { %v698_v57 = vpack.c.bf16 %v183_v55, %v181_v54  ;;  %v185_v60 = vld [vmem:[#allocation8 + $0x108] sm:$0xff]  ;;  %v187_v61 = vld [vmem:[#allocation8 + $0x118] sm:$0xff]  ;;  %v700_v62 = vpack.c.bf16 %v182_v59, %v180_v58  ;;  %v186_v1 = vld [vmem:[#allocation8 + $0x110] sm:$0xff]  ;;  %811 = vset.pattern.permute.xlu0 %v939_v52 }
  0x57   :  { %v702_v63 = vpack.c.bf16 %v187_v61, %v185_v60  ;;  %v189_v2 = vld [vmem:[#allocation8 + $0x128] sm:$0xff]  ;;  %v191_v3 = vld [vmem:[#allocation8 + $0x138] sm:$0xff]  ;;  %v188_v6 = vld [vmem:[#allocation8 + $0x120] sm:$0xff] }
  0x58   :  { %v706_v5 = vpack.c.bf16 %v191_v3, %v189_v2  ;;  %v190_v7 = vld [vmem:[#allocation8 + $0x130] sm:$0xff]  ;;  %v193_v8 = vld [vmem:[#allocation8 + $0x148] sm:$0xff]  ;;  %v195_v9 = vld [vmem:[#allocation8 + $0x158] sm:$0xff] }
  0x59   :  { %v708_v10 = vpack.c.bf16 %v190_v7, %v188_v6  ;;  %v710_v11 = vpack.c.bf16 %v195_v9, %v193_v8  ;;  %v192_v12 = vld [vmem:[#allocation8 + $0x140] sm:$0xff]  ;;  %v194_v13 = vld [vmem:[#allocation8 + $0x150] sm:$0xff]  ;;  %v197_v14 = vld [vmem:[#allocation8 + $0x168] sm:$0xff] }
  0x5a   :  { %v198_v21 = vld [vmem:[#allocation8 + $0x170] sm:$0xff]  ;;  %v201_v22 = vld [vmem:[#allocation8 + $0x188] sm:$0xff]  ;;  %v203_v23 = vld [vmem:[#allocation8 + $0x198] sm:$0xff] }
  0x5b   :  { %v205_v28 = vld [vmem:[#allocation8 + $0x1a8] sm:$0xff]  ;;  %v207_v29 = vld [vmem:[#allocation8 + $0x1b8] sm:$0xff]  ;;  %v219_v58 = vld [vmem:[%s1094_s4 + $0x18] sm:$0xff] }
  0x5c   :  { %v722_v31 = vpack.c.bf16 %v207_v29, %v205_v28  ;;  %v209_v34 = vld [vmem:[#allocation8 + $0x1c8] sm:$0xff]  ;;  %v211_v35 = vld [vmem:[#allocation8 + $0x1d8] sm:$0xff]  ;;  %v88_v7 = vld [vmem:[#allocation7] sm:$0xff] }
  0x5d   :  { %v726_v37 = vpack.c.bf16 %v211_v35, %v209_v34  ;;  %v213_v40 = vld [vmem:[#allocation8 + $0x1e8] sm:$0xff]  ;;  %v215_v41 = vld [vmem:[#allocation8 + $0x1f8] sm:$0xff]  ;;  %v90_v8 = vld [vmem:[#allocation7 + $0x10] sm:$0xff] }
  0x5e   :  { %v730_v43 = vpack.c.bf16 %v215_v41, %v213_v40  ;;  %v216_v55 = vld [vmem:[%s1094_s4] sm:$0xff]  ;;  %v93_v9 = vld [vmem:[#allocation7 + $0x28] sm:$0xff]  ;;  %v100_v28 = vld [vmem:[#allocation7 + $0x60] sm:$0xff] }
  0x5f   :  { %v102_v29 = vld [vmem:[#allocation7 + $0x70] sm:$0xff]  ;;  %v104_v34 = vld [vmem:[#allocation7 + $0x80] sm:$0xff] }
  0x60   :  { %v106_v35 = vld [vmem:[#allocation7 + $0x90] sm:$0xff]  ;;  %v108_v40 = vld [vmem:[#allocation7 + $0xa0] sm:$0xff] }
  0x61   :  { %v110_v41 = vld [vmem:[#allocation7 + $0xb0] sm:$0xff]  ;;  %v116_v52 = vld [vmem:[#allocation7 + $0xe0] sm:$0xff] }
 0x123   :  { %v1047_v15 = vpop.f32.mrb[0].mxu0 }
 0x124   :  { %v1049_v18 = vpop.f32.mrb[1].mxu0 }
 0x125   :  { %309 = vmatprep.subr.mxu1 %v1049_v18 }
 0x126   :  { %310 = vmatpush1.msra.mxu1 %v1047_v15 }
 0x127   :  { %659 = vmatmul.mubr.msk.f32.vlgmr.msra.gmra.mrb[0].mxu1 %vm302_vm1, %v664_v16  ;;  %671 = vmatprep.subr.bf16.mxu1 %v670_v17  ;;  %v199_v16 = vld [vmem:[#allocation8 + $0x178] sm:$0xff]  ;;  %v712_v17 = vpack.c.bf16 %v194_v13, %v192_v12  ;;  %v740_v12 = vpack.c.bf16 %v90_v8, %v88_v7  ;;  %v130_v7 = vld [vmem:[#allocation7 + $0x150] sm:$0xff]  ;;  %v133_v8 = vld [vmem:[#allocation7 + $0x168] sm:$0xff] }
 0x128   :  { %379 = vmatprep.mubr.f32.mxu1 %v938_v0  ;;  %673 = vmatpush1.bf16.msra.mxu1 %v672_v19  ;;  %v184_v0 = vld [vmem:[#allocation8 + $0x100] sm:$0xff]  ;;  %v714_v19 = vpack.c.bf16 %v199_v16, %v197_v14  ;;  %v94_v16 = vld [vmem:[#allocation7 + $0x30] sm:$0xff] }
 0x129   :  { %675 = vmatprep.subr.bf16.mxu1 %v674_v20  ;;  %v704_v4 = vpack.c.bf16 %v186_v1, %v184_v0  ;;  %v196_v20 = vld [vmem:[#allocation8 + $0x160] sm:$0xff]  ;;  %v91_v0 = vld [vmem:[#allocation7 + $0x18] sm:$0xff] }
 0x12a   :  { %v716_v24 = vpack.c.bf16 %v198_v21, %v196_v20  ;;  %v92_v14 = vld [vmem:[#allocation7 + $0x20] sm:$0xff] }
 0x12b   :  { %660 = vmatmul.mubr.msk.f32.gmra.mrb[2].mxu1 %vm302_vm1, %v665_v25  ;;  %v718_v25 = vpack.c.bf16 %v203_v23, %v201_v22  ;;  %v744_v20 = vpack.c.bf16 %v94_v16, %v92_v14  ;;  %v96_v22 = vld [vmem:[#allocation7 + $0x40] sm:$0xff]  ;;  %v98_v23 = vld [vmem:[#allocation7 + $0x50] sm:$0xff]  ;;  %v137_v14 = vld [vmem:[#allocation7 + $0x188] sm:$0xff] }
 0x12c   :  { %677 = vmatpush1.bf16.msra.mxu1 %v676_v26  ;;  %v200_v26 = vld [vmem:[#allocation8 + $0x180] sm:$0xff]  ;;  %v139_v16 = vld [vmem:[#allocation7 + $0x198] sm:$0xff] }
 0x12d   :  { %679 = vmatprep.subr.bf16.mxu1 %v678_v27  ;;  %v202_v27 = vld [vmem:[#allocation8 + $0x190] sm:$0xff] }
 0x12e   :  { %v720_v30 = vpack.c.bf16 %v202_v27, %v200_v26  ;;  %v748_v26 = vpack.c.bf16 %v98_v23, %v96_v22  ;;  %v141_v22 = vld [vmem:[#allocation7 + $0x1a8] sm:$0xff]  ;;  %v143_v23 = vld [vmem:[#allocation7 + $0x1b8] sm:$0xff] }
 0x130   :  { %681 = vmatpush1.bf16.msra.mxu1 %v680_v32  ;;  %v204_v32 = vld [vmem:[#allocation8 + $0x1a0] sm:$0xff] }
 0x131   :  { %683 = vmatprep.subr.bf16.mxu1 %v682_v33  ;;  %v206_v33 = vld [vmem:[#allocation8 + $0x1b0] sm:$0xff] }
 0x132   :  { %v724_v36 = vpack.c.bf16 %v206_v33, %v204_v32  ;;  %v752_v32 = vpack.c.bf16 %v102_v29, %v100_v28  ;;  %v145_v28 = vld [vmem:[#allocation7 + $0x1c8] sm:$0xff]  ;;  %v147_v29 = vld [vmem:[#allocation7 + $0x1d8] sm:$0xff] }
 0x134   :  { %685 = vmatpush1.bf16.msra.mxu1 %v684_v38  ;;  %v208_v38 = vld [vmem:[#allocation8 + $0x1c0] sm:$0xff] }
 0x135   :  { %687 = vmatprep.subr.bf16.mxu1 %v686_v39  ;;  %v210_v39 = vld [vmem:[#allocation8 + $0x1d0] sm:$0xff] }
 0x136   :  { %v728_v42 = vpack.c.bf16 %v210_v39, %v208_v38  ;;  %v756_v38 = vpack.c.bf16 %v106_v35, %v104_v34  ;;  %v149_v34 = vld [vmem:[#allocation7 + $0x1e8] sm:$0xff]  ;;  %v151_v35 = vld [vmem:[#allocation7 + $0x1f8] sm:$0xff] }
 0x138   :  { %689 = vmatpush1.bf16.msra.mxu1 %v688_v44  ;;  %v212_v44 = vld [vmem:[#allocation8 + $0x1e0] sm:$0xff] }
 0x139   :  { %691 = vmatprep.subr.bf16.mxu1 %v690_v45  ;;  %v214_v45 = vld [vmem:[#allocation8 + $0x1f0] sm:$0xff] }
 0x13a   :  { %v732_v46 = vpack.c.bf16 %v214_v45, %v212_v44  ;;  %v760_v44 = vpack.c.bf16 %v110_v41, %v108_v40 }
 0x13c   :  { %693 = vmatpush1.bf16.msra.mxu1 %v692_v50 }
 0x13d   :  { %695 = vmatprep.subr.bf16.mxu1 %v694_v51  ;;  %v226_v51 = vld [vmem:[%s1097_s7] sm:$0xff] }
 0x13e   :  { %543 = vperm.xlu0 %811, %v226_v51  }
 0x140   :  { %697 = vmatpush1.bf16.msra.mxu1 %v696_v56  ;;  %v218_v56 = vld [vmem:[%s1094_s4 + $0x10] sm:$0xff] }
 0x141   :  { %699 = vmatprep.subr.bf16.mxu1 %v698_v57  ;;  %v217_v57 = vld [vmem:[%s1094_s4 + $0x8] sm:$0xff]  ;;  %s940_s4 = smov [#allocation10]  }
 0x144   :  { %701 = vmatpush1.bf16.msra.mxu1 %v700_v62 }
 0x145   :  { %703 = vmatprep.subr.bf16.mxu1 %v702_v63  ;;  %v89_v63 = vld [vmem:[#allocation7 + $0x8] sm:$0xff] }
 0x146   :  { %v738_v6 = vpack.c.bf16 %v91_v0, %v89_v63  ;;  %v124_v0 = vld [vmem:[#allocation7 + $0x120] sm:$0xff] }
 0x148   :  { %705 = vmatpush1.bf16.msra.mxu1 %v704_v4  ;;  %v224_v4 = vld [vmem:[%s1096_s6] sm:$0xf]  ;;  %s647_s6 = sshll.u32 %s940_s4, 4  ;;  %s648_s6 = int_to_ptr.vmem [resolvable:$true] %s647_s6 }
 0x149   :  { %707 = vmatprep.subr.bf16.mxu1 %v706_v5  ;;  %s902_s0 = scalar_lea.vmem %s648_s6, 256  ;;  %p907_p5 = scmp.lt.s32.totalorder %s648_s6, %s648_s6 }
 0x14a   :  { %p903_p4 = scmp.ne.s32.totalorder %s648_s6, %s902_s0  ;;  %p908_p6 = scmp.lt.s32.totalorder %s902_s0, %s902_s0 }
 0x14c   :  { %709 = vmatpush1.bf16.msra.mxu1 %v708_v10  ;;  %v95_v10 = vld [vmem:[#allocation7 + $0x38] sm:$0xff]  ;;  %p909_p7 = por %p908_p6, %p907_p5 }
 0x14d   :  { %711 = vmatprep.subr.bf16.mxu1 %v710_v11  ;;  %v225_v11 = vunpack.c.l.bf16 %v224_v4  ;;  %v742_v13 = vpack.c.bf16 %v95_v10, %v93_v9  ;;  %v135_v9 = vld [vmem:[#allocation7 + $0x178] sm:$0xff] }
 0x14e   :  { %p910_p8 = pnand %p909_p7, %p903_p4 }
 0x150   :  { %713 = vmatpush1.bf16.msra.mxu1 %v712_v17  ;;  %v97_v17 = vld [vmem:[#allocation7 + $0x48] sm:$0xff] }
 0x151   :  { %715 = vmatprep.subr.bf16.mxu1 %v714_v19  ;;  %v99_v19 = vld [vmem:[#allocation7 + $0x58] sm:$0xff] }
 0x152   :  { %v746_v21 = vpack.c.bf16 %v99_v19, %v97_v17  ;;  %v786_v19 = vpack.c.bf16 %v139_v16, %v137_v14 }
 0x154   :  { %717 = vmatpush1.bf16.msra.mxu1 %v716_v24  ;;  %v101_v24 = vld [vmem:[#allocation7 + $0x68] sm:$0xff] }
 0x155   :  { %719 = vmatprep.subr.bf16.mxu1 %v718_v25  ;;  %v103_v25 = vld [vmem:[#allocation7 + $0x78] sm:$0xff] }
 0x156   :  { %v750_v27 = vpack.c.bf16 %v103_v25, %v101_v24  ;;  %v790_v25 = vpack.c.bf16 %v143_v23, %v141_v22 }
 0x158   :  { %721 = vmatpush1.bf16.msra.mxu1 %v720_v30  ;;  %v105_v30 = vld [vmem:[#allocation7 + $0x88] sm:$0xff] }
 0x159   :  { %723 = vmatprep.subr.bf16.mxu1 %v722_v31  ;;  %v107_v31 = vld [vmem:[#allocation7 + $0x98] sm:$0xff] }
 0x15a   :  { %v754_v33 = vpack.c.bf16 %v107_v31, %v105_v30  ;;  %v794_v31 = vpack.c.bf16 %v147_v29, %v145_v28 }
 0x15c   :  { %725 = vmatpush1.bf16.msra.mxu1 %v724_v36  ;;  %v109_v36 = vld [vmem:[#allocation7 + $0xa8] sm:$0xff] }
 0x15d   :  { %727 = vmatprep.subr.bf16.mxu1 %v726_v37  ;;  %v111_v37 = vld [vmem:[#allocation7 + $0xb8] sm:$0xff] }
 0x15e   :  { %v758_v39 = vpack.c.bf16 %v111_v37, %v109_v36  ;;  %v798_v37 = vpack.c.bf16 %v151_v35, %v149_v34 }
 0x160   :  { %729 = vmatpush1.bf16.msra.mxu1 %v728_v42  ;;  %v113_v42 = vld [vmem:[#allocation7 + $0xc8] sm:$0xff] }
 0x161   :  { %731 = vmatprep.subr.bf16.mxu1 %v730_v43  ;;  %v115_v43 = vld [vmem:[#allocation7 + $0xd8] sm:$0xff] }
 0x162   :  { %v762_v45 = vpack.c.bf16 %v115_v43, %v113_v42 }
 0x164   :  { %733 = vmatpush1.bf16.msra.mxu1 %v732_v46  ;;  %v112_v46 = vld [vmem:[#allocation7 + $0xc0] sm:$0xff] }
 0x1bd   :  { %v544_v43 = vpop.permute.xlu0 %543 }
 0x1fa   :  { %v375_v47 = vpop.f32.mrb[0].mxu1 }
 0x1fb   :  { %v377_v48 = vpop.f32.mrb[1].mxu1 }
 0x1fc   :  { %450 = vmatprep.mubr.f32.mxu1 %v377_v48  ;;  %v117_v48 = vld [vmem:[#allocation7 + $0xe8] sm:$0xff] }
 0x1fd   :  { %451 = vmatmul.mubr.f32.vlgmr.msra.gmra.mrb[4].mxu1 %v375_v47  ;;  %v114_v47 = vld [vmem:[#allocation7 + $0xd0] sm:$0xff] }
 0x1fe   :  { %v381_v49 = vpop.f32.mrb[2].mxu1 }
 0x1ff   :  { %v383_v50 = vpop.f32.mrb[3].mxu1 }
 0x200   :  { %456 = vmatprep.mubr.f32.mxu1 %v383_v50  ;;  %v764_v50 = vpack.c.bf16 %v114_v47, %v112_v46 }
 0x201   :  { %457 = vmatmul.mubr.f32.gmra.mrb[6].mxu1 %v381_v49  ;;  %v119_v49 = vld [vmem:[#allocation7 + $0xf8] sm:$0xff] }
 0x202   :  { %v766_v51 = vpack.c.bf16 %v119_v49, %v117_v48 }
 0x2d0   :  { %v452_v53 = vpop.f32.mrb[4].mxu1 }
 0x2d1   :  { %v454_v54 = vpop.f32.mrb[5].mxu1  ;;  %v463_v60 = vmul.f32 %v452_v53, %v216_v55  ;;  %v118_v53 = vld [vmem:[#allocation7 + $0xf0] sm:$0xff]  ;;  %v123_v55 = vld [vmem:[#allocation7 + $0x118] sm:$0xff] }
 0x2d2   :  { %v464_v1 = vmul.f32 %v454_v54, %v217_v57  ;;  %v121_v54 = vld [vmem:[#allocation7 + $0x108] sm:$0xff] }
 0x2d3   :  { %v770_v57 = vpack.c.bf16 %v123_v55, %v121_v54 }
 0x2d4   :  { %v458_v59 = vpop.f32.mrb[6].mxu1 }
 0x2d5   :  { %v465_v61 = vmul.f32 %v458_v59, %v218_v56  ;;  %v460_v62 = vpop.f32.mrb[7].mxu1  ;;  %v768_v56 = vpack.c.bf16 %v118_v53, %v116_v52  ;;  %v122_v59 = vld [vmem:[#allocation7 + $0x110] sm:$0xff] }
 0x2d6   :  { %v466_v2 = vmul.f32 %v460_v62, %v219_v58  ;;  %v120_v58 = vld [vmem:[#allocation7 + $0x100] sm:$0xff] }
 0x2d7   :  { %v736_v3 = vpack.c.bf16 %v465_v61, %v463_v60  ;;  %v125_v60 = vld [vmem:[#allocation7 + $0x128] sm:$0xff]  ;;  %v127_v61 = vld [vmem:[#allocation7 + $0x138] sm:$0xff]  ;;  %v772_v62 = vpack.c.bf16 %v122_v59, %v120_v58 }
 0x2d8   :  { %v734_v5 = vpack.c.bf16 %v466_v2, %v464_v1  ;;  %v774_v63 = vpack.c.bf16 %v127_v61, %v125_v60  ;;  %v126_v1 = vld [vmem:[#allocation7 + $0x130] sm:$0xff]  ;;  %v129_v2 = vld [vmem:[#allocation7 + $0x148] sm:$0xff] }
 0x2d9   :  { %v776_v4 = vpack.c.bf16 %v126_v1, %v124_v0 }
 0x2da   :  { %735 = vmatprep.subr.bf16.mxu0 %v734_v5 }
 0x2db   :  { %737 = vmatpush1.bf16.msra.mxu0 %v736_v3  ;;  %v131_v3 = vld [vmem:[#allocation7 + $0x158] sm:$0xff] }
 0x2dc   :  { %739 = vmatprep.subr.bf16.mxu0 %v738_v6  ;;  %v778_v5 = vpack.c.bf16 %v131_v3, %v129_v2  ;;  %v128_v6 = vld [vmem:[#allocation7 + $0x140] sm:$0xff] }
 0x2dd   :  { %v780_v10 = vpack.c.bf16 %v130_v7, %v128_v6 }
 0x2de   :  { %661 = vmatmul.mubr.msk.f32.vlgmr.msra.gmra.mrb[2].mxu0 %vm227_vm0, %v225_v11  ;;  %v782_v11 = vpack.c.bf16 %v135_v9, %v133_v8 }
 0x2df   :  { %741 = vmatpush1.bf16.msra.mxu0 %v740_v12  ;;  %612 = vmatprep.mubr.f32.mxu0 %v1049_v18  ;;  %v132_v12 = vld [vmem:[#allocation7 + $0x160] sm:$0xff] }
 0x2e0   :  { %743 = vmatprep.subr.bf16.mxu0 %v742_v13  ;;  %v134_v13 = vld [vmem:[#allocation7 + $0x170] sm:$0xff] }
 0x2e1   :  { %v784_v17 = vpack.c.bf16 %v134_v13, %v132_v12 }
 0x2e3   :  { %745 = vmatpush1.bf16.msra.mxu0 %v744_v20  ;;  %v136_v20 = vld [vmem:[#allocation7 + $0x180] sm:$0xff] }
 0x2e4   :  { %747 = vmatprep.subr.bf16.mxu0 %v746_v21  ;;  %v138_v21 = vld [vmem:[#allocation7 + $0x190] sm:$0xff] }
 0x2e5   :  { %v788_v24 = vpack.c.bf16 %v138_v21, %v136_v20 }
 0x2e7   :  { %749 = vmatpush1.bf16.msra.mxu0 %v748_v26  ;;  %v140_v26 = vld [vmem:[#allocation7 + $0x1a0] sm:$0xff] }
 0x2e8   :  { %751 = vmatprep.subr.bf16.mxu0 %v750_v27  ;;  %v142_v27 = vld [vmem:[#allocation7 + $0x1b0] sm:$0xff] }
 0x2e9   :  { %v792_v30 = vpack.c.bf16 %v142_v27, %v140_v26 }
 0x2eb   :  { %753 = vmatpush1.bf16.msra.mxu0 %v752_v32  ;;  %v144_v32 = vld [vmem:[#allocation7 + $0x1c0] sm:$0xff] }
 0x2ec   :  { %755 = vmatprep.subr.bf16.mxu0 %v754_v33  ;;  %v146_v33 = vld [vmem:[#allocation7 + $0x1d0] sm:$0xff] }
 0x2ed   :  { %v796_v36 = vpack.c.bf16 %v146_v33, %v144_v32 }
 0x2ef   :  { %757 = vmatpush1.bf16.msra.mxu0 %v756_v38  ;;  %v148_v38 = vld [vmem:[#allocation7 + $0x1e0] sm:$0xff] }
 0x2f0   :  { %759 = vmatprep.subr.bf16.mxu0 %v758_v39  ;;  %v150_v39 = vld [vmem:[#allocation7 + $0x1f0] sm:$0xff] }
 0x2f1   :  { %v800_v40 = vpack.c.bf16 %v150_v39, %v148_v38 }
 0x2f3   :  { %761 = vmatpush1.bf16.msra.mxu0 %v760_v44 }
 0x2f4   :  { %763 = vmatprep.subr.bf16.mxu0 %v762_v45 }
 0x2f7   :  { %765 = vmatpush1.bf16.msra.mxu0 %v764_v50 }
 0x2f8   :  { %767 = vmatprep.subr.bf16.mxu0 %v766_v51 }
 0x2fb   :  { %769 = vmatpush1.bf16.msra.mxu0 %v768_v56 }
 0x2fc   :  { %771 = vmatprep.subr.bf16.mxu0 %v770_v57 }
 0x2ff   :  { %773 = vmatpush1.bf16.msra.mxu0 %v772_v62 }
 0x300   :  { %775 = vmatprep.subr.bf16.mxu0 %v774_v63 }
 0x303   :  { %777 = vmatpush1.bf16.msra.mxu0 %v776_v4 }
 0x304   :  { %779 = vmatprep.subr.bf16.mxu0 %v778_v5 }
 0x307   :  { %781 = vmatpush1.bf16.msra.mxu0 %v780_v10 }
 0x308   :  { %783 = vmatprep.subr.bf16.mxu0 %v782_v11 }
 0x30b   :  { %785 = vmatpush1.bf16.msra.mxu0 %v784_v17 }
 0x30c   :  { %787 = vmatprep.subr.bf16.mxu0 %v786_v19 }
 0x30f   :  { %789 = vmatpush1.bf16.msra.mxu0 %v788_v24 }
 0x310   :  { %791 = vmatprep.subr.bf16.mxu0 %v790_v25 }
 0x313   :  { %793 = vmatpush1.bf16.msra.mxu0 %v792_v30 }
 0x314   :  { %795 = vmatprep.subr.bf16.mxu0 %v794_v31 }
 0x317   :  { %797 = vmatpush1.bf16.msra.mxu0 %v796_v36 }
 0x318   :  { %799 = vmatprep.subr.bf16.mxu0 %v798_v37 }
 0x31b   :  { %801 = vmatpush1.bf16.msra.mxu0 %v800_v40 }
 0x31e   :  { %613 = vmatmul.mubr.f32.vlgmr.msra.gmra.mrb[4].mxu0 %v1047_v15 }
 0x3b1   :  { %v536_v41 = vpop.f32.mrb[2].mxu0 }
 0x3b2   :  { %v538_v42 = vpop.f32.mrb[3].mxu0  ;;  %v546_v44 = vmul.f32 %v544_v43, %v536_v41 }
 0x3b3   :  { %v547_v45 = vmul.f32 %v544_v43, %v538_v42 }
 0x3f1   :  { %v614_v46 = vpop.f32.mrb[4].mxu0 }
 0x3f2   :  { %v615_v47 = vadd.f32 %v614_v46, %v546_v44  ;;  %v616_v48 = vpop.f32.mrb[5].mxu0 }
 0x3f3   :  { %v617_v49 = vadd.f32 %v616_v48, %v547_v45 }
 0x3f5   :  { %v619_v50 = vadd.f32 %v617_v49, %v615_v47 }
 0x3f7   :  { %620 = vadd.xlane.f32.xlu0 %v619_v50 }
 0x484   :  { %v621_v51 = vpop.xlane.xlu0 %620 }
 0x485   :  { %v622_v52 = vmul.f32 0.00390625, %v621_v51 }
 0x487   :  { %v623_v53 = vsub.f32 %v615_v47, %v622_v52  ;;  %v624_v54 = vsub.f32 %v617_v49, %v622_v52 }
 0x489   :  { %v625_v55 = vmul.f32 %v623_v53, %v623_v53  ;;  %v626_v56 = vmul.f32 %v624_v54, %v624_v54 }
 0x48b   :  { %v627_v57 = vadd.f32 %v626_v56, %v625_v55 }
 0x48d   :  { %628 = vadd.xlane.f32.xlu1 %v627_v57 }
 0x51a   :  { %v629_v58 = vpop.xlane.xlu1 %628 }
 0x51b   :  { %v630_v59 = vmul.f32 0.00390625, %v629_v58 }
 0x51d   :  { %v631_v60 = vadd.f32 1e-05, %v630_v59 }
 0x51f   :  { %812 = vrsqrt.f32 %v631_v60 }
 0x529   :  { %v813_v61 = vpop.eup %812 }
 0x52a   :  { %v633_v62 = vmul.f32 %v813_v61, %v623_v53  ;;  %v634_v63 = vmul.f32 %v813_v61, %v624_v54 }
 0x52c   :  { %v635_v0 = vmax.f32 %v633_v62, 0.0  ;;  %v636_v1 = vmax.f32 %v634_v63, 0.0 }
 0x52e   :  { %v637_v2 = vadd.f32 %v635_v0, %v1047_v15  ;;  %v638_v3 = vadd.f32 %v636_v1, %v1049_v18 }
 0x530   :  { %639 = vst [vmem:[#allocation10] sm:$0xff] %v637_v2  ;;  %640 = vst [vmem:[#allocation10 + $0x8] sm:$0xff] %v638_v3 }
 0x531   :  { %913 = shalt.err (!%p910_p8)
}
 0x532   :  { %s914_s23 = scalar_lea.hbm %s1098_s8, 256 }
 0x533   :  { %p915_p9 = scmp.ne.s32.totalorder %s1098_s8, %s914_s23  ;;  %p918_p10 = scmp.lt.u32.totalorder %s914_s23, %s1098_s8 }
 0x535   :  { %p920_p11 = pnand %p918_p10, %p915_p9 }
 0x537   :  { %923 = shalt.err (!%p920_p11)
}
 0x538   :  { %650 = dma.vmem_to_hbm [thread:$0]  %s648_s6, 256, %s1098_s8, [#allocation4]  }
 0x539   :  { %930 = dma.done.wait [#allocation4], 256  }
 0x53a   :  { %931 = vsyncadd [#allocation4], 4294967040 }
 0x53b   :  { %654 = vsyncpa [#allocation3], 1 }
 0x53c   :  { %655 = vsyncpa [#allocation6], 1 }
 0x53d   :  { %656 = vsyncpa [#allocation9], 1 }
 0x53e   :  { %657 = vsyncpa [#allocation4], 1 }

</bundles_post_ra>
